<compile_context>
chip_gen: v7x
topology: tpu7x:2x2x1
jax: 0.10.0
libtpu: 0.0.40
codegen_flags: <defaults>
</compile_context>

<pallas_src>
import functools

import jax
import jax.numpy as jnp
from jax.experimental import pallas as pl
from jax.experimental.pallas import tpu as pltpu


def _proj_kernel(x_ref, w_ref, b_ref, o_ref):
    # x_ref: (bm, K) compute dtype; w_ref: (K, E) compute dtype (VMEM-resident)
    # b_ref: (1, E) f32;            o_ref: (bm, E) output dtype
    acc = jnp.dot(x_ref[...], w_ref[...], preferred_element_type=jnp.float32)
    o_ref[...] = (acc + b_ref[...]).astype(o_ref.dtype)


def _pick_block_m(hw: int, max_bm: int) -> int:
    """Largest M tile that divides h*w, is <= max_bm, and respects the sublane rule."""
    if hw <= max_bm:
        return hw                      # full-extent block is always legal
    for d in range(max_bm, 7, -1):     # need a multiple of 8 (second-minor dim)
        if d % 8 == 0 and hw % d == 0:
            return d
    return hw                          # fallback: whole image per grid step


@functools.partial(jax.jit, static_argnames=("patch_size", "compute_dtype", "block_m"))
def patch_embedding(x, weight, bias, patch_size, *,
                    compute_dtype=jnp.bfloat16, block_m=1024):
    """ViT patch embedding forward.

    x:      (B, C, H, W)  NCHW, like PyTorch.
    weight: (E, K)        PyTorch nn.Linear layout, K = patch_size**2 * C with
                          features ordered (p1, p2, c).
    bias:   (E,)
    Returns (B, num_patches, E) in x.dtype.
    """
    B, C, H, W = x.shape
    p = patch_size
    if H % p != 0 or W % p != 0:
        raise ValueError(f"H={H}, W={W} must be divisible by patch_size={p}")
    h, w = H // p, W // p
    hw = h * w
    K = p * p * C
    E = weight.shape[0]
    out_dtype = x.dtype
    cdtype = jnp.dtype(compute_dtype) if compute_dtype is not None else jnp.dtype(x.dtype)

    # --- Patch extraction (channel-major per-patch flatten: (c, p1, p2)) -----
    # Innermost contiguous run is p2 = p elements (not C) -> cheap HBM copy;
    # the cast to the compute dtype is fused into the same copy by XLA.
    xp = x.reshape(B, C, h, p, w, p)
    xp = jnp.transpose(xp, (0, 2, 4, 1, 3, 5)).reshape(B, hw, K).astype(cdtype)

    # Permute weight columns once ((p1,p2,c) -> (c,p1,p2)), tiny (E,K) op, so
    # xp @ wt reproduces the PyTorch feature ordering exactly.
    wt = weight.reshape(E, p, p, C).transpose(0, 3, 1, 2).reshape(E, K).T  # (K, E)
    wt = wt.astype(cdtype)
    b2 = bias.astype(jnp.float32).reshape(1, E)

    # --- Tiling -----------------------------------------------------------------
    bm = _pick_block_m(hw, block_m)
    grid = (B, hw // bm)

    # Double-buffered VMEM footprint (activation + weight + bias + output).
    csz = cdtype.itemsize
    osz = jnp.dtype(out_dtype).itemsize
    footprint = 2 * (bm * K * csz + K * E * csz + E * 4 + bm * E * osz)
    vmem_limit = min(max(int(footprint * 1.25) + (4 << 20), 16 << 20), 64 << 20)

    out = pl.pallas_call(
        _proj_kernel,
        out_shape=jax.ShapeDtypeStruct((B, hw, E), out_dtype),
        grid=grid,
        in_specs=[
            # Activations: each (b, m) tile streamed from HBM exactly once.
            pl.BlockSpec((None, bm, K), lambda b, m: (b, m, 0)),
            # Weight slab: constant block index -> fetched once, VMEM-resident.
            pl.BlockSpec((K, E), lambda b, m: (0, 0)),
            # Bias slab: constant block index -> fetched once.
            pl.BlockSpec((1, E), lambda b, m: (0, 0)),
        ],
        # Write the final (B, h*w, E) layout directly: no post-kernel slice copy.
        out_specs=pl.BlockSpec((None, bm, E), lambda b, m: (b, m, 0)),
        compiler_params=pltpu.CompilerParams(
            # No reduction axis -> both grid axes independent (megacore sharding).
            dimension_semantics=("parallel", "parallel"),
            vmem_limit_bytes=vmem_limit,
        ),
    )(xp, wt, b2)

    return out


if __name__ == "__main__":
    # Small shapes consistent with the module: patch_size=8, in_channels=3.
    B, C, H, W = 2, 3, 16, 16
    patch_size = 8
    embed_dim = 128
    K = patch_size * patch_size * C  # 192

    key = jax.random.PRNGKey(0)
    kx, kw, kb = jax.random.split(key, 3)

    x = jax.random.normal(kx, (B, C, H, W), dtype=jnp.float32)

    # Deterministic nn.Linear-style init: U(-1/sqrt(K), 1/sqrt(K))
    bound = 1.0 / (K ** 0.5)
    weight = jax.random.uniform(kw, (embed_dim, K), minval=-bound, maxval=bound,
                                dtype=jnp.float32)
    bias = jax.random.uniform(kb, (embed_dim,), minval=-bound, maxval=bound,
                              dtype=jnp.float32)

    # Pure-JAX reference of the PyTorch forward (original (p1, p2, c) order).
    h, w = H // patch_size, W // patch_size
    num_patches = h * w
    xp_ref = x.reshape(B, C, h, patch_size, w, patch_size)
    xp_ref = jnp.transpose(xp_ref, (0, 2, 4, 3, 5, 1)).reshape(B, num_patches, K)
    ref_f32 = xp_ref @ weight.T + bias

    # 1) Default bf16 compute path (f32 accumulation in-kernel).
    out_bf = jax.block_until_ready(patch_embedding(x, weight, bias, patch_size))
    ref_bf = (xp_ref.astype(jnp.bfloat16).astype(jnp.float32)
              @ weight.astype(jnp.bfloat16).astype(jnp.float32).T + bias)
    assert out_bf.shape == (B, num_patches, embed_dim)
    assert out_bf.dtype == x.dtype
    assert jnp.allclose(out_bf, ref_bf, atol=5e-3, rtol=5e-3)

    # 2) Explicit f32 compute path.
    out_f32 = jax.block_until_ready(
        patch_embedding(x, weight, bias, patch_size, compute_dtype=jnp.float32))
    assert out_f32.shape == (B, num_patches, embed_dim)
    assert jnp.allclose(out_f32, ref_f32, atol=1e-3, rtol=1e-3)

    print("KERNEL_OK")
</pallas_src>

<mosaic_0001>
module attributes {stable_mosaic.version = 11 : i64} {
  func.func @_proj_kernel(%arg0: i32, %arg1: i32, %arg2: memref<1x4x192xbf16, #tpu.memory_space<vmem>>, %arg3: memref<192x128xbf16, #tpu.memory_space<vmem>>, %arg4: memref<1x128xf32, #tpu.memory_space<vmem>>, %arg5: memref<1x4x128xf32, #tpu.memory_space<vmem>>) attributes {dimension_semantics = [#tpu.dimension_semantics<parallel>, #tpu.dimension_semantics<parallel>], iteration_bounds = array<i64: 2, 1>, scalar_prefetch = 0 : i64, scratch_operands = 0 : i64, tpu.core_type = #tpu.core_type<tc>, window_params = [{transform_indices = @transform_0, window_bounds = array<i64: 1, 4, 192>}, {pipeline_mode = #tpu.pipeline_mode<synchronous>, transform_indices = @transform_1, window_bounds = array<i64: 192, 128>}, {pipeline_mode = #tpu.pipeline_mode<synchronous>, transform_indices = @transform_2, window_bounds = array<i64: 1, 128>}, {transform_indices = @transform_3, window_bounds = array<i64: 1, 4, 128>}]} {
    %c0 = arith.constant 0 : index
    %c0_0 = arith.constant 0 : index
    %c0_1 = arith.constant 0 : index
    %0 = vector.load %arg2[%c0, %c0_0, %c0_1] : memref<1x4x192xbf16, #tpu.memory_space<vmem>>, vector<1x4x192xbf16>
    %1 = vector.shape_cast %0 : vector<1x4x192xbf16> to vector<4x192xbf16>
    %c0_2 = arith.constant 0 : index
    %c0_3 = arith.constant 0 : index
    %2 = vector.load %arg3[%c0_2, %c0_3] : memref<192x128xbf16, #tpu.memory_space<vmem>>, vector<192x128xbf16>
    %cst = arith.constant dense<0.000000e+00> : vector<4x128xf32>
    %3 = tpu.matmul %1, %2, %cst {dimension_numbers = #tpu.dot_dimension_numbers<[1], [0], [0], [1], [0, 0, 1, 1], [], []>} : vector<4x192xbf16>, vector<192x128xbf16>, vector<4x128xf32> -> vector<4x128xf32>
    %c0_4 = arith.constant 0 : index
    %c0_5 = arith.constant 0 : index
    %4 = vector.load %arg4[%c0_4, %c0_5] : memref<1x128xf32, #tpu.memory_space<vmem>>, vector<1x128xf32>
    %5 = vector.broadcast %4 : vector<1x128xf32> to vector<4x128xf32>
    %6 = arith.addf %3, %5 : vector<4x128xf32>
    %c0_6 = arith.constant 0 : index
    %c0_7 = arith.constant 0 : index
    %c0_8 = arith.constant 0 : index
    %7 = vector.load %arg5[%c0_6, %c0_7, %c0_8] : memref<1x4x128xf32, #tpu.memory_space<vmem>>, vector<1x4x128xf32>
    %8 = vector.shape_cast %7 : vector<1x4x128xf32> to vector<4x128xf32>
    %9 = vector.shape_cast %6 : vector<4x128xf32> to vector<1x4x128xf32>
    tpu.vector_store %arg5[%c0_6, %c0_7, %c0_8], %9 {strides = array<i32>} : memref<1x4x128xf32, #tpu.memory_space<vmem>>, vector<1x4x128xf32>,
    return
  }
  func.func @transform_0(%arg0: i32, %arg1: i32) -> (i32, i32, i32) {
    %c0_i32 = arith.constant 0 : i32
    %c0_i32_0 = arith.constant 0 : i32
    return %arg0, %arg1, %c0_i32 : i32, i32, i32
  }
  func.func @transform_1(%arg0: i32, %arg1: i32) -> (i32, i32) {
    %c0_i32 = arith.constant 0 : i32
    %c0_i32_0 = arith.constant 0 : i32
    %c0_i32_1 = arith.constant 0 : i32
    return %c0_i32, %c0_i32_0 : i32, i32
  }
  func.func @transform_2(%arg0: i32, %arg1: i32) -> (i32, i32) {
    %c0_i32 = arith.constant 0 : i32
    %c0_i32_0 = arith.constant 0 : i32
    %c0_i32_1 = arith.constant 0 : i32
    return %c0_i32, %c0_i32_0 : i32, i32
  }
  func.func @transform_3(%arg0: i32, %arg1: i32) -> (i32, i32, i32) {
    %c0_i32 = arith.constant 0 : i32
    %c0_i32_0 = arith.constant 0 : i32
    return %arg0, %arg1, %c0_i32 : i32, i32, i32
  }
}

</mosaic_0001>

<bundles_post_ra>
// kernel: patch_embedding.1
= control target key start
LH: loop header
LB: loop body
LE: loop exit
PB: predicated region body
PF: predicated region fallthrough
CT: control target
= control target key end

     0   :  { %8 = vsyncpa [#allocation3], 0  ;;  %s798_s0 = inlined_call_operand.vmem [shape: bf16[2,4,192], index: 0, kind: input, shape index: {}]   ;;  %s799_s1 = inlined_call_operand.vmem [shape: bf16[192,128], index: 1, kind: input, shape index: {}]   ;;  %s800_s2 = inlined_call_operand.vmem [shape: f32[1,128], index: 2, kind: input, shape index: {}]   ;;  %s801_s3 = inlined_call_operand.hbm [shape: f32[2,4,128], index: 3, kind: output, shape index: {}]  }
   0x1   :  { %10 = vsyncpa [#allocation3 + $0x1], 0  ;;  %s647_s12 = smov 0   ;;  %s649_s13 = smov 0  }
   0x2   :  { %s651_s14 = smov 0   ;;  %s653_s15 = smov 0  }
   0x3   :  { %s655_s16 = smov 0   ;;  %s657_s17 = smov 0  }
   0x4 LB: > { %s449_s18 = sadd.s32 4294967295, %s623_s17   ;;  %s450_s19 = sadd.s32 4294967294, %s623_s17   ;;  %s623_s17 = sphi %s657_s17, %s16_s17   ;;  %s619_s16 = sphi %s655_s16, %s808_s16   ;;  %s615_s15 = sphi %s653_s15, %s807_s15   ;;  %s611_s14 = sphi %s651_s14, %s806_s14   ;;  %s607_s13 = sphi %s649_s13, %s805_s13   ;;  %s603_s12 = sphi %s647_s12, %s804_s12  }
   0x5   : > { %s28_s20 = sadd.s32 1, %s619_s16  ;;  %s107_s21 = sadd.s32 1, %s611_s14 }
   0x6   : > { %p30_p0 = scmp.ge.s32.totalorder %s28_s20, 2  ;;  %p117_p1 = scmp.ne.s32.totalorder %s611_s14, %s607_s13 }
   0x7   : > { %p118_p2 = scmp.eq.s32.totalorder %s449_s18, 1  ;;  %p123_p3 = scmp.ne.s32.totalorder %s607_s13, %s603_s12 }
   0x8   : > { %s810_s20 = smov (%p30_p0, %s28_s20), 0  ;;  %p124_p5 = scmp.eq.s32.totalorder %s450_s19, 1 }
   0x9   : > { %p687_p4 = por %p118_p2, %p117_p1  ;;  %s102_s23 = ssub.s32 %s619_s16, %s810_s20 }
   0xa   : > { %p453_p6 = scmp.ge.s32.totalorder %s623_s17, 1  ;;  %p105_p7 = scmp.eq.s32.totalorder %s102_s23, 0 }
   0xb   : > { %p694_p8 = por %p124_p5, %p123_p3  ;;  %p160_p9 = scmp.lt.s32.totalorder %s623_s17, 3 }
   0xc   : > { %s700_s25 = scalar_select %p105_p7, %s611_s14, %s107_s21  }
   0xd   : > { %p161_p10 = pnand %p453_p6, %p160_p9 }
   0xe   : > { %v533_v0 = vld [vmem:[%s799_s1] sm:$0xff] (!%p161_p10)   ;;  %v625_v1 = vmov (!%p161_p10), 0   ;;  %p188_p11 = scmp.lt.s32.totalorder (!%p161_p10), %s615_s15, 1  ;;  %v534_v2 = vld [vmem:[%s799_s1 + $0x8] sm:$0xff] (!%p161_p10)   ;;  %v535_v3 = vld [vmem:[%s799_s1 + $0x10] sm:$0xff] (!%p161_p10)   ;;  %vm312_vm0 = vcmask (!%p161_p10), 523264  }
   0xf   : > { %164 = sbr.rel (%p161_p10) target bundleno = 291 (0x123), region = 32  ;;  %316 = vmatprep.subr.bf16.mxu0 (!%p161_p10), %v625_v1  ;;  %v536_v4 = vld [vmem:[%s799_s1 + $0x18] sm:$0xff] (!%p161_p10)   ;;  %v537_v7 = vld [vmem:[%s799_s1 + $0x20] sm:$0xff] (!%p161_p10)   ;;  %v538_v8 = vld [vmem:[%s799_s1 + $0x28] sm:$0xff] (!%p161_p10)   ;;  %s185_s11 = sand.u32 (!%p161_p10), 1, %s607_s13  }
  0x10   : > { %317 = vmatpush1.bf16.msra.mxu0 (!%p161_p10), %v533_v0  ;;  %v539_v9 = vld [vmem:[%s799_s1 + $0x30] sm:$0xff] (!%p161_p10)   ;;  %v540_v10 = vld [vmem:[%s799_s1 + $0x38] sm:$0xff] (!%p161_p10)   ;;  %v541_v11 = vld [vmem:[%s799_s1 + $0x40] sm:$0xff] (!%p161_p10)   ;;  %s454_s18 = sshll.u32 (!%p161_p10), %s185_s11, 2  ;;  %s473_s23 = sshll.u32 (!%p161_p10), %s615_s15, 6 }
  0x11   : > { %318 = vmatprep.subr.bf16.mxu0 (!%p161_p10), %v625_v1  ;;  %v542_v12 = vld [vmem:[%s799_s1 + $0x48] sm:$0xff] (!%p161_p10)   ;;  %v543_v13 = vld [vmem:[%s799_s1 + $0x50] sm:$0xff] (!%p161_p10)   ;;  %v544_v14 = vld [vmem:[%s799_s1 + $0x58] sm:$0xff] (!%p161_p10)   ;;  %s187_s26 = scalar_lea.vmem (!%p161_p10), [#allocation2], %s454_s18  ;;  %s358_s4 = scalar_lea.sflag (!%p161_p10), [#allocation3], %s185_s11 }
  0x12   : > { %v457_v15 = vld [vmem:[%s800_s2] ss:$0 sm:$0xff] (!%p161_p10)  ;;  %s372_s27 = sshll.u32 (!%p161_p10), %s187_s26, 4  ;;  %s626_s5 = smov (!%p161_p10), [#allocation2]   ;;  %s753_s27 = int_to_ptr.vmem [resolvable:$true] %s372_s27 }
  0x14   : > { %319 = vmatpush1.bf16.msra.mxu0 (!%p161_p10), %v534_v2 }
  0x15   : > { %320 = vmatprep.subr.bf16.mxu0 (!%p161_p10), %v625_v1 }
  0x16   : > { %s189_s30 = scalar_select %p188_p11, %s615_s15, 1 }
  0x17   : > { %s545_s15 = scalar_lea.vmem %s753_s27, 64 }
  0x18   : > { %s476_s6 = sshll.u32 %s189_s30, 2  ;;  %321 = vmatpush1.bf16.msra.mxu0 %v535_v3  ;;  %s751_s30 = scalar_lea.hbm %s801_s3, %s473_s23 }
  0x19   : > { %s196_s9 = scalar_lea.vmem %s798_s0, %s476_s6  ;;  %322 = vmatprep.subr.bf16.mxu0 %v625_v1  ;;  %p546_p12 = scmp.ne.s32.totalorder %s753_s27, %s545_s15 }
  0x1a   : > { %v458_v5 = vld.sshfl [vmem:[%s196_s9] sm:$0x33 pattern:$0x76325410]  ;;  %s549_s6 = sshll.u32 %s626_s5, 4  ;;  %s550_s6 = int_to_ptr.vmem [resolvable:$false] %s549_s6 }
  0x1b   : > { %v238_v6 = vcombine.high %v458_v5, %v458_v5  ;;  %p547_p13 = pnand %p546_p12, %p687_p4  ;;  %s551_s7 = scalar_lea.vmem %s550_s6, 128 }
  0x1c   : > { %323 = vmatpush1.bf16.msra.mxu0 %v536_v4  ;;  %p552_p1 = scmp.lt.s32.totalorder %s753_s27, %s550_s6  ;;  %p553_p2 = scmp.lt.s32.totalorder %s551_s7, %s545_s15 }
  0x1d   : > { %324 = vmatprep.subr.bf16.mxu0 %v625_v1  ;;  %471 = vmatprep.mubr.msk.bf16.mxu0 %vm312_vm0, %v238_v6  ;;  %p548_p0 = pneg %p547_p13 }
  0x1e   : > { %p554_p3 = por %p553_p2, %p552_p1 }
  0x20   : > { %325 = vmatpush1.bf16.msra.mxu0 %v537_v7  ;;  %p555_p5 = pnand %p554_p3, %p548_p0 }
  0x21   : > { %326 = vmatprep.subr.bf16.mxu0 %v625_v1 }
  0x24   : > { %327 = vmatpush1.bf16.msra.mxu0 %v538_v8 }
  0x25   : > { %328 = vmatprep.subr.bf16.mxu0 %v625_v1 }
  0x28   : > { %329 = vmatpush1.bf16.msra.mxu0 %v539_v9 }
  0x29   : > { %330 = vmatprep.subr.bf16.mxu0 %v625_v1 }
  0x2c   : > { %331 = vmatpush1.bf16.msra.mxu0 %v540_v10 }
  0x2d   : > { %332 = vmatprep.subr.bf16.mxu0 %v625_v1 }
  0x30   : > { %333 = vmatpush1.bf16.msra.mxu0 %v541_v11 }
  0x31   : > { %334 = vmatprep.subr.bf16.mxu0 %v625_v1 }
  0x34   : > { %335 = vmatpush1.bf16.msra.mxu0 %v542_v12 }
  0x35   : > { %336 = vmatprep.subr.bf16.mxu0 %v625_v1 }
  0x38   : > { %337 = vmatpush1.bf16.msra.mxu0 %v543_v13 }
  0x39   : > { %338 = vmatprep.subr.bf16.mxu0 %v625_v1 }
  0x3c   : > { %339 = vmatpush1.bf16.msra.mxu0 %v544_v14 }
  0x3f   : > { %349 = vmatmul.mubr.bf16.vlgmr.msra.gmra.mrb[0].mxu0 %v458_v5 }
 0x112   : > { %v350_v16 = vpop.f32.mrb[0].mxu0 }
 0x113   : > { %v351_v17 = vadd.f32 %v457_v15, %v350_v16  ;;  %v352_v18 = vpop.f32.mrb[1].mxu0 }
 0x114   : > { %v353_v19 = vpop.f32.mrb[2].mxu0 }
 0x115   : > { %356 = vst [vmem:[%s187_s26] sm:$0xf] %v351_v17  ;;  %v354_v20 = vpop.f32.mrb[3].mxu0 }
 0x116   : > { %558 = shalt.err (!%p555_p5)
}
 0x117   : > { %s559_s8 = scalar_lea.hbm %s751_s30, 64  ;;  %s563_s11 = scalar_lea.hbm %s801_s3, 128 }
 0x118   : > { %p560_p6 = scmp.ne.s32.totalorder %s751_s30, %s559_s8  ;;  %p564_p10 = scmp.lt.u32.totalorder %s751_s30, %s801_s3 }
 0x119   : > { %p565_p11 = scmp.lt.u32.totalorder %s563_s11, %s559_s8  ;;  %p567_p13 = scmp.lt.u32.totalorder %s559_s8, %s751_s30 }
 0x11a   : > { %p561_p7 = pnand %p560_p6, %p687_p4 }
 0x11b   : > { %p566_p12 = por %p565_p11, %p564_p10 }
 0x11c   : > { %p562_p9 = pneg %p561_p7 }
 0x11d   : > { %p568_p0 = por %p567_p13, %p566_p12 }
 0x11f   : > { %p569_p1 = pnand %p568_p0, %p562_p9 }
 0x121   : > { %572 = shalt.err (!%p569_p1)
}
 0x122   : > { %477 = dma.vmem_to_hbm [thread:$0]  (%p687_p4), %s753_s27, 64, %s751_s30, %s358_s4  }
 0x123 PF: > { %p483_p2 = scmp.ge.s32.totalorder %s623_s17, 2  ;;  %s384_s21 = sand.u32 1, %s603_s12  }
 0x124   : > { %s385_s23 = scalar_lea.sflag [#allocation3], %s384_s21 }
 0x125   : > { %p480_p3 = pnand %p483_p2, %p694_p8 }
 0x127   : > { %598 = dma.done.wait (!%p480_p3), %s385_s23, 64  }
 0x128   : > { %600 = vsyncadd (!%p480_p3), %s385_s23, 4294967232  ;;  %s16_s17 = sadd.s32 1, %s623_s17   ;;  %s804_s12 = smov %s607_s13 }
 0x129   : > { %p13_p5 = scmp.ge.s32.totalorder %s16_s17, 4   ;;  %s805_s13 = smov %s611_s14 }
 0x12a   : > { %s806_s14 = smov %s700_s25  ;;  %s807_s15 = smov %s619_s16 }
 0x12b   : > { %s808_s16 = smov %s810_s20  ;;  %15 = sbr.rel (!%p13_p5) target bundleno = 4 (0x4), region = 67 }
 0x132   :  { %390 = vsyncpa [#allocation3], 1 }
 0x133   :  { %392 = vsyncpa [#allocation3 + $0x1], 1 }

</bundles_post_ra>
